<compile_context>
chip_gen: v5e
topology: v5e:2x2
jax: 0.10.0
libtpu: 0.0.40
codegen_flags: <defaults>
</compile_context>

<pallas_src>
import functools

import jax
import jax.numpy as jnp
from jax import lax
from jax.experimental import pallas as pl
from jax.experimental.pallas import tpu as pltpu


def _round_up(x, m):
    return ((x + m - 1) // m) * m


# ----------------------------------------------------------------------------
# Kernel: one batch image per grid step.
#   x_ref : (sh, sw, C_in, Lf)    phase-split, spatially-flattened padded input
#   w_ref : (kh*kw, C_out, C_in)  per-tap weight matrices
#   b_ref : (C_out, 1)            bias (f32)
#   o_ref : (C_out, Lpad)         flattened output rows (Lpad >= H_out*Ws)
# ----------------------------------------------------------------------------
def _conv_tap_kernel(x_ref, w_ref, b_ref, o_ref, *, kh, kw, sh, sw, Ws):
    C_out, Lpad = o_ref.shape          # lane-dense output block
    acc = jnp.zeros((C_out, Lpad), jnp.float32)
    # kh*kw is small and static -> fully unrolled tap loop, accumulate in f32.
    for ki in range(kh):
        pi, oi = ki % sh, ki // sh
        for kj in range(kw):
            pj, oj = kj % sw, kj // sw
            start = oi * Ws + oj       # static Python int -> static lane slice
            # Contiguous lane slice of the phase-(pi,pj) sub-grid: (C_in, Lpad)
            rhs = x_ref[pi, pj, :, pl.ds(start, Lpad)]
            w_t = w_ref[ki * kw + kj]                     # (C_out, C_in)
            acc = acc + jnp.dot(w_t, rhs, preferred_element_type=jnp.float32)
    o_ref[...] = (acc + b_ref[...]).astype(o_ref.dtype)   # f32 epilogue


def _conv2d_forward(x, weight, bias, stride, padding, *, compute_dtype=jnp.float32):
    """x: (N, C_in, H, W) f32; weight: (C_out, C_in, kh, kw); bias: (C_out,)."""
    N, C_in, H, W = x.shape
    C_out, _, kh, kw = weight.shape
    sh, sw = stride
    ph, pw = padding

    H_out = (H + 2 * ph - kh) // sh + 1
    W_out = (W + 2 * pw - kw) // sw + 1

    # Stride-grid extents (ceil division over the stride phases).
    Hs = pl.cdiv(H + 2 * ph, sh)
    Ws = pl.cdiv(W + 2 * pw, sw)

    # Lane-dense output length.  Round up to a multiple of 128 (unmasked vst)
    # only when the relative overhead stays small; otherwise keep exact.
    Lout = H_out * Ws
    Lpad = _round_up(Lout, 128)
    if Lpad - Lout > max(Lout // 8, 0):   # >12.5% junk lanes -> not worth it
        Lpad = Lout

    # Input padding: conv zero-padding + alignment to the stride grid + enough
    # phantom rows so that *every* tap's flattened slice of length Lpad stays
    # in bounds (max tap offset = ((kh-1)//sh)*Ws + (kw-1)//sw).
    max_start = ((kh - 1) // sh) * Ws + ((kw - 1) // sw)
    Hf = max(Hs + 1, pl.cdiv(max_start + Lpad, Ws))
    Lf = Hf * Ws
    pad_h = (ph, Hf * sh - H - ph)
    pad_w = (pw, Ws * sw - W - pw)
    xp = jnp.pad(x, ((0, 0), (0, 0), pad_h, pad_w))

    # Space-to-depth over stride phases: (N, sh, sw, C_in, Hf, Ws), then
    # flatten (row, col) -> one lane axis.  This is the *only* activation
    # permutation; all tap slices become contiguous static lane windows.
    xs = xp.reshape(N, C_in, Hf, sh, Ws, sw).transpose(0, 3, 5, 1, 2, 4)
    xf = xs.reshape(N, sh, sw, C_in, Lf).astype(compute_dtype)

    # Weights as per-tap (C_out, C_in) matrices, tap index t = ki*kw + kj
    # (matches torch unfold's (c, ki, kj) flattening of weight.view(C_out,-1)).
    w_taps = (weight.transpose(2, 3, 0, 1)
                    .reshape(kh * kw, C_out, C_in).astype(compute_dtype))
    bias2d = bias.reshape(C_out, 1).astype(jnp.float32)

    kernel = functools.partial(_conv_tap_kernel, kh=kh, kw=kw, sh=sh, sw=sw, Ws=Ws)

    itemsize = jnp.dtype(compute_dtype).itemsize
    cost = pl.CostEstimate(
        flops=2 * N * C_out * C_in * kh * kw * Lpad,
        transcendentals=0,
        bytes_accessed=int((xf.size + w_taps.size) * itemsize
                           + bias2d.size * 4 + N * C_out * Lpad * 4),
    )

    out = pl.pallas_call(
        kernel,
        out_shape=jax.ShapeDtypeStruct((N, C_out, Lpad), jnp.float32),
        grid_spec=pltpu.PrefetchScalarGridSpec(
            num_scalar_prefetch=0,
            grid=(N,),   # one full image per step: big tiles, tiny grid overhead
            in_specs=[
                pl.BlockSpec((None, sh, sw, C_in, Lf),
                             lambda n: (n, 0, 0, 0, 0)),
                # Weight / bias block indices are constant across the grid ->
                # they stay resident in VMEM (no re-DMA per step).
                pl.BlockSpec((kh * kw, C_out, C_in), lambda n: (0, 0, 0)),
                pl.BlockSpec((C_out, 1), lambda n: (0, 0)),
            ],
            out_specs=pl.BlockSpec((None, C_out, Lpad), lambda n: (n, 0, 0)),
        ),
        compiler_params=pltpu.CompilerParams(
            dimension_semantics=("parallel",),        # batch shards across TCs
            vmem_limit_bytes=32 * 1024 * 1024,        # safe on v5e/v6e/v7x
        ),
        cost_estimate=cost,
    )(xf, w_taps, bias2d)

    # (N, C_out, Lpad) -> drop junk lanes, reshape, drop overshoot columns.
    # Cheap: operates on the small output, already in NCHW order.
    # TODO(synk): for very large images, additionally band the grid over output
    # rows so the per-image block stays well under the scoped VMEM limit.
    return out[:, :, :Lout].reshape(N, C_out, H_out, Ws)[:, :, :, :W_out]


class Conv2d:
    """JAX/Pallas re-implementation of the PyTorch Conv2d module's forward."""

    def __init__(self, input_channels, output_channels, kernel_size,
                 stride=1, padding=0, *, key=None, compute_dtype=jnp.float32):
        self.input_channels = input_channels
        self.output_channels = output_channels
        self.kernel_size = ((kernel_size, kernel_size)
                            if isinstance(kernel_size, int) else tuple(kernel_size))
        self.stride = (stride, stride) if isinstance(stride, int) else tuple(stride)
        self.padding = (padding, padding) if isinstance(padding, int) else tuple(padding)
        self.compute_dtype = compute_dtype  # set to jnp.bfloat16 on v6e/v7x for more speed

        k_sqrt = (1.0 / (input_channels * self.kernel_size[0] * self.kernel_size[1])) ** 0.5
        if key is None:
            key = jax.random.PRNGKey(0)
        kw_, kb_ = jax.random.split(key)
        # Same U(-k_sqrt, k_sqrt) init distribution as the torch module.
        self.weight = jax.random.uniform(
            kw_, (output_channels, input_channels,
                  self.kernel_size[0], self.kernel_size[1]),
            dtype=jnp.float32, minval=-k_sqrt, maxval=k_sqrt)
        self.bias = jax.random.uniform(
            kb_, (output_channels,), dtype=jnp.float32,
            minval=-k_sqrt, maxval=k_sqrt)

        # One jitted forward per module instance: fuses the pad / space-to-depth
        # / slice around the pallas_call and removes per-call dispatch overhead.
        self._fwd = jax.jit(functools.partial(
            _conv2d_forward, stride=self.stride, padding=self.padding,
            compute_dtype=self.compute_dtype))

    def forward(self, x):
        return self._fwd(x, self.weight, self.bias)

    __call__ = forward


def _ref_conv(x, conv):
    return lax.conv_general_dilated(
        x, conv.weight, window_strides=conv.stride,
        padding=[(conv.padding[0], conv.padding[0]),
                 (conv.padding[1], conv.padding[1])],
        dimension_numbers=("NCHW", "OIHW", "NCHW"),
        precision=lax.Precision.HIGHEST,
    ) + conv.bias.reshape(1, -1, 1, 1)


if __name__ == "__main__":
    key = jax.random.PRNGKey(0)
    k_x, k_p = jax.random.split(key)

    # Small shapes consistent with the module: batch=2, C_in=4, 16x16 spatial,
    # C_out=8, 3x3 kernel, stride=2, padding=1.
    x = jax.random.normal(k_x, (2, 4, 16, 16), dtype=jnp.float32)
    conv = Conv2d(4, 8, 3, stride=2, padding=1, key=k_p)

    y = jax.block_until_ready(conv(x))
    y_ref = _ref_conv(x, conv)
    assert y.shape == y_ref.shape == (2, 8, 8, 8), y.shape
    assert jnp.allclose(y, y_ref, atol=1e-4, rtol=1e-4), \
        float(jnp.max(jnp.abs(y - y_ref)))

    # stride=1 path through the same kernel.
    conv1 = Conv2d(4, 8, 3, stride=1, padding=1, key=k_p)
    y1 = jax.block_until_ready(conv1(x))
    y1_ref = _ref_conv(x, conv1)
    assert y1.shape == y1_ref.shape == (2, 8, 16, 16), y1.shape
    assert jnp.allclose(y1, y1_ref, atol=1e-4, rtol=1e-4), \
        float(jnp.max(jnp.abs(y1 - y1_ref)))

    # Larger spatial size exercising the lane-padded (Lpad % 128 == 0) path.
    x2 = jax.random.normal(k_x, (2, 4, 32, 32), dtype=jnp.float32)
    y2 = jax.block_until_ready(conv1(x2))
    y2_ref = _ref_conv(x2, conv1)
    assert y2.shape == y2_ref.shape == (2, 8, 32, 32), y2.shape
    assert jnp.allclose(y2, y2_ref, atol=1e-4, rtol=1e-4), \
        float(jnp.max(jnp.abs(y2 - y2_ref)))

    print("KERNEL_OK")
</pallas_src>

<mosaic_0001>
module attributes {stable_mosaic.version = 11 : i64} {
  func.func @_conv_tap_kernel(%arg0: i32, %arg1: memref<1x2x2x4x90xf32, #tpu.memory_space<vmem>>, %arg2: memref<9x8x4xf32, #tpu.memory_space<vmem>>, %arg3: memref<8x1xf32, #tpu.memory_space<vmem>>, %arg4: memref<1x8x72xf32, #tpu.memory_space<vmem>>) attributes {dimension_semantics = [#tpu.dimension_semantics<parallel>], iteration_bounds = array<i64: 2>, scalar_prefetch = 0 : i64, scratch_operands = 0 : i64, tpu.core_type = #tpu.core_type<tc>, window_params = [{transform_indices = @transform_0, window_bounds = array<i64: 1, 2, 2, 4, 90>}, {pipeline_mode = #tpu.pipeline_mode<synchronous>, transform_indices = @transform_1, window_bounds = array<i64: 9, 8, 4>}, {pipeline_mode = #tpu.pipeline_mode<synchronous>, transform_indices = @transform_2, window_bounds = array<i64: 8, 1>}, {transform_indices = @transform_3, window_bounds = array<i64: 1, 8, 72>}]} {
    %cst = arith.constant 0.000000e+00 : f32
    %0 = vector.broadcast %cst : f32 to vector<8x72xf32>
    %c0 = arith.constant 0 : index
    %c0_0 = arith.constant 0 : index
    %c0_1 = arith.constant 0 : index
    %c0_2 = arith.constant 0 : index
    %c0_3 = arith.constant 0 : index
    %1 = vector.load %arg1[%c0, %c0_0, %c0_1, %c0_2, %c0_3] : memref<1x2x2x4x90xf32, #tpu.memory_space<vmem>>, vector<1x1x1x4x72xf32>
    %2 = vector.shape_cast %1 : vector<1x1x1x4x72xf32> to vector<4x72xf32>
    %c0_4 = arith.constant 0 : index
    %c0_5 = arith.constant 0 : index
    %c0_6 = arith.constant 0 : index
    %3 = vector.load %arg2[%c0_4, %c0_5, %c0_6] : memref<9x8x4xf32, #tpu.memory_space<vmem>>, vector<1x8x4xf32>
    %4 = vector.shape_cast %3 : vector<1x8x4xf32> to vector<8x4xf32>
    %cst_7 = arith.constant dense<0.000000e+00> : vector<8x72xf32>
    %5 = tpu.matmul %4, %2, %cst_7 {dimension_numbers = #tpu.dot_dimension_numbers<[1], [0], [0], [1], [0, 0, 1, 1], [], []>} : vector<8x4xf32>, vector<4x72xf32>, vector<8x72xf32> -> vector<8x72xf32>
    %6 = arith.addf %0, %5 : vector<8x72xf32>
    %c0_8 = arith.constant 0 : index
    %c0_9 = arith.constant 0 : index
    %c1 = arith.constant 1 : index
    %c0_10 = arith.constant 0 : index
    %c0_11 = arith.constant 0 : index
    %7 = vector.load %arg1[%c0_8, %c0_9, %c1, %c0_10, %c0_11] : memref<1x2x2x4x90xf32, #tpu.memory_space<vmem>>, vector<1x1x1x4x72xf32>
    %8 = vector.shape_cast %7 : vector<1x1x1x4x72xf32> to vector<4x72xf32>
    %c1_12 = arith.constant 1 : index
    %c0_13 = arith.constant 0 : index
    %c0_14 = arith.constant 0 : index
    %9 = vector.load %arg2[%c1_12, %c0_13, %c0_14] : memref<9x8x4xf32, #tpu.memory_space<vmem>>, vector<1x8x4xf32>
    %10 = vector.shape_cast %9 : vector<1x8x4xf32> to vector<8x4xf32>
    %cst_15 = arith.constant dense<0.000000e+00> : vector<8x72xf32>
    %11 = tpu.matmul %10, %8, %cst_15 {dimension_numbers = #tpu.dot_dimension_numbers<[1], [0], [0], [1], [0, 0, 1, 1], [], []>} : vector<8x4xf32>, vector<4x72xf32>, vector<8x72xf32> -> vector<8x72xf32>
    %12 = arith.addf %6, %11 : vector<8x72xf32>
    %c0_16 = arith.constant 0 : index
    %c0_17 = arith.constant 0 : index
    %c0_18 = arith.constant 0 : index
    %c0_19 = arith.constant 0 : index
    %c1_20 = arith.constant 1 : index
    %13 = vector.load %arg1[%c0_16, %c0_17, %c0_18, %c0_19, %c1_20] : memref<1x2x2x4x90xf32, #tpu.memory_space<vmem>>, vector<1x1x1x4x72xf32>
    %14 = vector.shape_cast %13 : vector<1x1x1x4x72xf32> to vector<4x72xf32>
    %c2 = arith.constant 2 : index
    %c0_21 = arith.constant 0 : index
    %c0_22 = arith.constant 0 : index
    %15 = vector.load %arg2[%c2, %c0_21, %c0_22] : memref<9x8x4xf32, #tpu.memory_space<vmem>>, vector<1x8x4xf32>
    %16 = vector.shape_cast %15 : vector<1x8x4xf32> to vector<8x4xf32>
    %cst_23 = arith.constant dense<0.000000e+00> : vector<8x72xf32>
    %17 = tpu.matmul %16, %14, %cst_23 {dimension_numbers = #tpu.dot_dimension_numbers<[1], [0], [0], [1], [0, 0, 1, 1], [], []>} : vector<8x4xf32>, vector<4x72xf32>, vector<8x72xf32> -> vector<8x72xf32>
    %18 = arith.addf %12, %17 : vector<8x72xf32>
    %c0_24 = arith.constant 0 : index
    %c1_25 = arith.constant 1 : index
    %c0_26 = arith.constant 0 : index
    %c0_27 = arith.constant 0 : index
    %c0_28 = arith.constant 0 : index
    %19 = vector.load %arg1[%c0_24, %c1_25, %c0_26, %c0_27, %c0_28] : memref<1x2x2x4x90xf32, #tpu.memory_space<vmem>>, vector<1x1x1x4x72xf32>
    %20 = vector.shape_cast %19 : vector<1x1x1x4x72xf32> to vector<4x72xf32>
    %c3 = arith.constant 3 : index
    %c0_29 = arith.constant 0 : index
    %c0_30 = arith.constant 0 : index
    %21 = vector.load %arg2[%c3, %c0_29, %c0_30] : memref<9x8x4xf32, #tpu.memory_space<vmem>>, vector<1x8x4xf32>
    %22 = vector.shape_cast %21 : vector<1x8x4xf32> to vector<8x4xf32>
    %cst_31 = arith.constant dense<0.000000e+00> : vector<8x72xf32>
    %23 = tpu.matmul %22, %20, %cst_31 {dimension_numbers = #tpu.dot_dimension_numbers<[1], [0], [0], [1], [0, 0, 1, 1], [], []>} : vector<8x4xf32>, vector<4x72xf32>, vector<8x72xf32> -> vector<8x72xf32>
    %24 = arith.addf %18, %23 : vector<8x72xf32>
    %c0_32 = arith.constant 0 : index
    %c1_33 = arith.constant 1 : index
    %c1_34 = arith.constant 1 : index
    %c0_35 = arith.constant 0 : index
    %c0_36 = arith.constant 0 : index
    %25 = vector.load %arg1[%c0_32, %c1_33, %c1_34, %c0_35, %c0_36] : memref<1x2x2x4x90xf32, #tpu.memory_space<vmem>>, vector<1x1x1x4x72xf32>
    %26 = vector.shape_cast %25 : vector<1x1x1x4x72xf32> to vector<4x72xf32>
    %c4 = arith.constant 4 : index
    %c0_37 = arith.constant 0 : index
    %c0_38 = arith.constant 0 : index
    %27 = vector.load %arg2[%c4, %c0_37, %c0_38] : memref<9x8x4xf32, #tpu.memory_space<vmem>>, vector<1x8x4xf32>
    %28 = vector.shape_cast %27 : vector<1x8x4xf32> to vector<8x4xf32>
    %cst_39 = arith.constant dense<0.000000e+00> : vector<8x72xf32>
    %29 = tpu.matmul %28, %26, %cst_39 {dimension_numbers = #tpu.dot_dimension_numbers<[1], [0], [0], [1], [0, 0, 1, 1], [], []>} : vector<8x4xf32>, vector<4x72xf32>, vector<8x72xf32> -> vector<8x72xf32>
    %30 = arith.addf %24, %29 : vector<8x72xf32>
    %c0_40 = arith.constant 0 : index
    %c1_41 = arith.constant 1 : index
    %c0_42 = arith.constant 0 : index
    %c0_43 = arith.constant 0 : index
    %c1_44 = arith.constant 1 : index
    %31 = vector.load %arg1[%c0_40, %c1_41, %c0_42, %c0_43, %c1_44] : memref<1x2x2x4x90xf32, #tpu.memory_space<vmem>>, vector<1x1x1x4x72xf32>
    %32 = vector.shape_cast %31 : vector<1x1x1x4x72xf32> to vector<4x72xf32>
    %c5 = arith.constant 5 : index
    %c0_45 = arith.constant 0 : index
    %c0_46 = arith.constant 0 : index
    %33 = vector.load %arg2[%c5, %c0_45, %c0_46] : memref<9x8x4xf32, #tpu.memory_space<vmem>>, vector<1x8x4xf32>
    %34 = vector.shape_cast %33 : vector<1x8x4xf32> to vector<8x4xf32>
    %cst_47 = arith.constant dense<0.000000e+00> : vector<8x72xf32>
    %35 = tpu.matmul %34, %32, %cst_47 {dimension_numbers = #tpu.dot_dimension_numbers<[1], [0], [0], [1], [0, 0, 1, 1], [], []>} : vector<8x4xf32>, vector<4x72xf32>, vector<8x72xf32> -> vector<8x72xf32>
    %36 = arith.addf %30, %35 : vector<8x72xf32>
    %c0_48 = arith.constant 0 : index
    %c0_49 = arith.constant 0 : index
    %c0_50 = arith.constant 0 : index
    %c0_51 = arith.constant 0 : index
    %c9 = arith.constant 9 : index
    %37 = vector.load %arg1[%c0_48, %c0_49, %c0_50, %c0_51, %c9] : memref<1x2x2x4x90xf32, #tpu.memory_space<vmem>>, vector<1x1x1x4x72xf32>
    %38 = vector.shape_cast %37 : vector<1x1x1x4x72xf32> to vector<4x72xf32>
    %c6 = arith.constant 6 : index
    %c0_52 = arith.constant 0 : index
    %c0_53 = arith.constant 0 : index
    %39 = vector.load %arg2[%c6, %c0_52, %c0_53] : memref<9x8x4xf32, #tpu.memory_space<vmem>>, vector<1x8x4xf32>
    %40 = vector.shape_cast %39 : vector<1x8x4xf32> to vector<8x4xf32>
    %cst_54 = arith.constant dense<0.000000e+00> : vector<8x72xf32>
    %41 = tpu.matmul %40, %38, %cst_54 {dimension_numbers = #tpu.dot_dimension_numbers<[1], [0], [0], [1], [0, 0, 1, 1], [], []>} : vector<8x4xf32>, vector<4x72xf32>, vector<8x72xf32> -> vector<8x72xf32>
    %42 = arith.addf %36, %41 : vector<8x72xf32>
    %c0_55 = arith.constant 0 : index
    %c0_56 = arith.constant 0 : index
    %c1_57 = arith.constant 1 : index
    %c0_58 = arith.constant 0 : index
    %c9_59 = arith.constant 9 : index
    %43 = vector.load %arg1[%c0_55, %c0_56, %c1_57, %c0_58, %c9_59] : memref<1x2x2x4x90xf32, #tpu.memory_space<vmem>>, vector<1x1x1x4x72xf32>
    %44 = vector.shape_cast %43 : vector<1x1x1x4x72xf32> to vector<4x72xf32>
    %c7 = arith.constant 7 : index
    %c0_60 = arith.constant 0 : index
    %c0_61 = arith.constant 0 : index
    %45 = vector.load %arg2[%c7, %c0_60, %c0_61] : memref<9x8x4xf32, #tpu.memory_space<vmem>>, vector<1x8x4xf32>
    %46 = vector.shape_cast %45 : vector<1x8x4xf32> to vector<8x4xf32>
    %cst_62 = arith.constant dense<0.000000e+00> : vector<8x72xf32>
    %47 = tpu.matmul %46, %44, %cst_62 {dimension_numbers = #tpu.dot_dimension_numbers<[1], [0], [0], [1], [0, 0, 1, 1], [], []>} : vector<8x4xf32>, vector<4x72xf32>, vector<8x72xf32> -> vector<8x72xf32>
    %48 = arith.addf %42, %47 : vector<8x72xf32>
    %c0_63 = arith.constant 0 : index
    %c0_64 = arith.constant 0 : index
    %c0_65 = arith.constant 0 : index
    %c0_66 = arith.constant 0 : index
    %c10 = arith.constant 10 : index
    %49 = vector.load %arg1[%c0_63, %c0_64, %c0_65, %c0_66, %c10] : memref<1x2x2x4x90xf32, #tpu.memory_space<vmem>>, vector<1x1x1x4x72xf32>
    %50 = vector.shape_cast %49 : vector<1x1x1x4x72xf32> to vector<4x72xf32>
    %c8 = arith.constant 8 : index
    %c0_67 = arith.constant 0 : index
    %c0_68 = arith.constant 0 : index
    %51 = vector.load %arg2[%c8, %c0_67, %c0_68] : memref<9x8x4xf32, #tpu.memory_space<vmem>>, vector<1x8x4xf32>
    %52 = vector.shape_cast %51 : vector<1x8x4xf32> to vector<8x4xf32>
    %cst_69 = arith.constant dense<0.000000e+00> : vector<8x72xf32>
    %53 = tpu.matmul %52, %50, %cst_69 {dimension_numbers = #tpu.dot_dimension_numbers<[1], [0], [0], [1], [0, 0, 1, 1], [], []>} : vector<8x4xf32>, vector<4x72xf32>, vector<8x72xf32> -> vector<8x72xf32>
    %54 = arith.addf %48, %53 : vector<8x72xf32>
    %c0_70 = arith.constant 0 : index
    %c0_71 = arith.constant 0 : index
    %55 = vector.load %arg3[%c0_70, %c0_71] : memref<8x1xf32, #tpu.memory_space<vmem>>, vector<8x1xf32>
    %56 = vector.broadcast %55 : vector<8x1xf32> to vector<8x72xf32>
    %57 = arith.addf %54, %56 : vector<8x72xf32>
    %c0_72 = arith.constant 0 : index
    %c0_73 = arith.constant 0 : index
    %c0_74 = arith.constant 0 : index
    %58 = vector.load %arg4[%c0_72, %c0_73, %c0_74] : memref<1x8x72xf32, #tpu.memory_space<vmem>>, vector<1x8x72xf32>
    %59 = vector.shape_cast %58 : vector<1x8x72xf32> to vector<8x72xf32>
    %60 = vector.shape_cast %57 : vector<8x72xf32> to vector<1x8x72xf32>
    tpu.vector_store %arg4[%c0_72, %c0_73, %c0_74], %60 {strides = array<i32>} : memref<1x8x72xf32, #tpu.memory_space<vmem>>, vector<1x8x72xf32>,
    return
  }
  func.func @transform_0(%arg0: i32) -> (i32, i32, i32, i32, i32) {
    %c0_i32 = arith.constant 0 : i32
    %c0_i32_0 = arith.constant 0 : i32
    %c0_i32_1 = arith.constant 0 : i32
    %c0_i32_2 = arith.constant 0 : i32
    %c0_i32_3 = arith.constant 0 : i32
    return %arg0, %c0_i32, %c0_i32_0, %c0_i32_1, %c0_i32_2 : i32, i32, i32, i32, i32
  }
  func.func @transform_1(%arg0: i32) -> (i32, i32, i32) {
    %c0_i32 = arith.constant 0 : i32
    %c0_i32_0 = arith.constant 0 : i32
    %c0_i32_1 = arith.constant 0 : i32
    %c0_i32_2 = arith.constant 0 : i32
    return %c0_i32, %c0_i32_0, %c0_i32_1 : i32, i32, i32
  }
  func.func @transform_2(%arg0: i32) -> (i32, i32) {
    %c0_i32 = arith.constant 0 : i32
    %c0_i32_0 = arith.constant 0 : i32
    %c0_i32_1 = arith.constant 0 : i32
    return %c0_i32, %c0_i32_0 : i32, i32
  }
  func.func @transform_3(%arg0: i32) -> (i32, i32, i32) {
    %c0_i32 = arith.constant 0 : i32
    %c0_i32_0 = arith.constant 0 : i32
    %c0_i32_1 = arith.constant 0 : i32
    return %arg0, %c0_i32, %c0_i32_0 : i32, i32, i32
  }
}

</mosaic_0001>

<bundles_post_ra>
// kernel: _conv2d_forward.1
= control target key start
LH: loop header
LB: loop body
LE: loop exit
PB: predicated region body
PF: predicated region fallthrough
CT: control target
= control target key end

     0   :  { %s589_s12 = smov 0   ;;  %s658_s0 = inlined_call_operand.vmem [shape: f32[2,2,2,4,90], index: 0, kind: input, shape index: {}]   ;;  %s659_s1 = inlined_call_operand.vmem [shape: f32[9,8,4], index: 1, kind: input, shape index: {}]   ;;  %s660_s2 = inlined_call_operand.vmem [shape: f32[8,1], index: 2, kind: input, shape index: {}]   ;;  %s661_s3 = inlined_call_operand.vmem [shape: f32[2,8,72], index: 3, kind: output, shape index: {}]  }
   0x1 LB: > { %s503_s13 = sadd.s32 4294967295, %s563_s12   ;;  %p507_p0 = scmp.ge.s32.totalorder %s563_s12, 1  ;;  %s563_s12 = sphi %s589_s12, %s13_s12  }
   0x2   : > { %p137_p1 = scmp.lt.s32.totalorder %s563_s12, 3 }
   0x4   : > { %p138_p2 = pnand %p507_p0, %p137_p1 }
   0x5   : > { %p160_p3 = scmp.lt.s32.totalorder (!%p138_p2), %s503_s13, 1  ;;  %s565_s18 = smov (!%p138_p2), 127  }
   0x6   : > { %141 = sbr.rel (%p138_p2) target bundleno = 280 (0x118), region = 32  ;;  %s566_s19 = smov (!%p138_p2), 119  }
   0x7   : > { %s567_s20 = smov (!%p138_p2), 118  }
   0xb   : > { %s663_s13 = smov (!%p160_p3, %s503_s13), 1  ;;  %vm179_vm0 = vcmask 1043456   ;;  %vm175_vm1 = vcmask 31744   ;;  %v512_v3 = vld [vmem:[%s659_s1 + $0x8] sm:$0xff]  ;;  %v521_v4 = vld [vmem:[%s659_s1 + $0x18] sm:$0xff]  ;;  %v170_v5 = vld [vmem:[%s659_s1] sm:$0xff] }
   0xc   : > { %s542_s14 = sshll.u32 %s663_s13, 4  ;;  %v525_v7 = vld [vmem:[%s659_s1 + $0x20] sm:$0xff]  ;;  %v568_v9 = vmov 0   ;;  %v517_v12 = vld [vmem:[%s659_s1 + $0x10] sm:$0xff]  ;;  %v534_v13 = vld [vmem:[%s659_s1 + $0x38] sm:$0xff]  ;;  %s510_s16 = sshll.u32 %s663_s13, 3 }
   0xd   : > { %s164_s17 = scalar_lea.vmem %s658_s0, %s542_s14  ;;  %555 = vset.pattern.permute.xlu2 %v568_v9  ;;  %v441_v10 = vld [vmem:[%s660_s2] sm:$0xff]  ;;  %556 = vset.pattern.permute.xlu0 %v568_v9  ;;  %v531_v16 = vld [vmem:[%s659_s1 + $0x30] sm:$0xff]  ;;  %v528_v17 = vld [vmem:[%s659_s1 + $0x28] sm:$0xff]  ;;  %vm448_vm2 = vcmask 588800  }
   0xe   : > { %v169_v0 = vld [vmem:[%s164_s17] sm:$0xf]  ;;  %v511_v1 = vld [vmem:[%s164_s17 + $0x4] sm:$0xf]  ;;  %v520_v2 = vld [vmem:[%s164_s17 + $0x8] sm:$0xf] }
   0xf   : > { %231 = vrot.lane.b32.xlu0 %v169_v0, %s565_s18  ;;  %383 = vrot.lane.b32.xlu1 %v511_v1, %s566_s19  ;;  %v524_v6 = vld [vmem:[%s164_s17 + $0xc] sm:$0xf]  ;;  %v537_v11 = vld [vmem:[%s659_s1 + $0x40] sm:$0xff] }
  0x10   : > { %413 = vrot.lane.b32.xlu2 %v169_v0, %s567_s20  ;;  %522 = vmatpush.msk.msra.mxu3 %vm179_vm0, %v520_v2 }
  0x11   : > { %513 = vmatpush.msk.msra.mxu0 %vm179_vm0, %v511_v1  ;;  %515 = vmatpush.msk.msra.mxu1 %vm179_vm0, %v169_v0 }
  0x12   : > { %514 = vmatmul.msk.f32.vlgmr.msra.gmra.mxu0 %vm175_vm1, %v512_v3  ;;  %523 = vmatmul.msk.f32.vlgmr.msra.gmra.mxu3 %vm175_vm1, %v521_v4 }
  0x13   : > { %516 = vmatmul.msk.f32.vlgmr.msra.gmra.mxu1 %vm175_vm1, %v170_v5  ;;  %526 = vmatpush.msk.msrb.mxu0 %vm179_vm0, %v524_v6 }
  0x17   : > { %353 = vrot.lane.b32.xlu0 %v169_v0, %s566_s19  ;;  %323 = vrot.lane.b32.xlu1 %v520_v2, %s565_s18  ;;  %s168_s19 = scalar_lea.vmem %s661_s3, %s510_s16 }
  0x18   : > { %444 = vperm.xlu2 %555, %v441_v10  }
  0x1a   : > { %527 = vmatmul.msk.f32.vlgmr.msrb.gmra.mxu0 %vm175_vm1, %v525_v7 }
  0x6a   : > { %v414_v8 = vpop.permute.xlu2 %413 }
  0x6b   : > { %538 = vmatpush.msk.msra.mxu0 %vm179_vm0, %v414_v8 }
  0x6c   : > { %539 = vmatmul.msk.f32.vlgmr.msra.gmra.mxu0 %vm175_vm1, %v537_v11 }
  0x72   : > { %v445_v36 = vpop.permute.xlu2 %444 }
  0x81   : > { %v232_v14 = vpop.permute.xlu0 %231  ;;  %v384_v15 = vpop.permute.xlu1 %383 }
  0x82   : > { %518 = vmatpush.msk.msra.mxu2 %vm179_vm0, %v232_v14  ;;  %535 = vmatpush.msk.msrb.mxu3 %vm179_vm0, %v384_v15 }
  0x83   : > { %519 = vmatmul.msk.f32.vlgmr.msra.gmra.mxu2 %vm175_vm1, %v517_v12  ;;  %536 = vmatmul.msk.f32.vlgmr.msrb.gmra.mxu3 %vm175_vm1, %v534_v13 }
  0x89   : > { %v354_v18 = vpop.permute.xlu0 %353  ;;  %v324_v19 = vpop.permute.xlu1 %323 }
  0x8a   : > { %532 = vmatpush.msk.msrb.mxu2 %vm179_vm0, %v354_v18  ;;  %529 = vmatpush.msk.msrb.mxu1 %vm179_vm0, %v324_v19 }
  0x8b   : > { %533 = vmatmul.msk.f32.vlgmr.msrb.gmra.mxu2 %vm175_vm1, %v531_v16  ;;  %530 = vmatmul.msk.f32.vlgmr.msrb.gmra.mxu1 %vm175_vm1, %v528_v17 }
  0x8f   : > { %v200_v20 = vpop.f32.mrf.mxu0 }
  0x90   : > { %v226_v21 = vpop.f32.mrf.mxu1 }
  0x91   : > { %v227_v23 = vadd.f32 %v226_v21, %v200_v20 }
  0x95   : > { %v286_v22 = vpop.f32.mrf.mxu3 }
  0x97   : > { %v317_v25 = vpop.f32.mrf.mxu0 }
  0xe9   : > { %v437_v34 = vpop.f32.mrf.mxu0 }
 0x106   : > { %v255_v24 = vpop.f32.mrf.mxu2  ;;  %v407_v32 = vpop.f32.mrf.mxu3 }
 0x107   : > { %v258_v26 = vadd.f32 %v255_v24, %v227_v23 }
 0x108   : > { %v347_v28 = vpop.f32.mrf.mxu1 }
 0x109   : > { %v289_v27 = vadd.f32 %v286_v22, %v258_v26 }
 0x10b   : > { %v320_v29 = vadd.f32 %v317_v25, %v289_v27 }
 0x10d   : > { %v350_v30 = vadd.f32 %v347_v28, %v320_v29 }
 0x10e   : > { %v377_v31 = vpop.f32.mrf.mxu2 }
 0x10f   : > { %v380_v33 = vadd.f32 %v377_v31, %v350_v30 }
 0x111   : > { %v410_v35 = vadd.f32 %v407_v32, %v380_v33 }
 0x113   : > { %v440_v37 = vadd.f32 %v437_v34, %v410_v35 }
 0x115   : > { %v447_v38 = vadd.f32 %v445_v36, %v440_v37 }
 0x117   : > { %449 = vst.msk [vmem:[%s168_s19] sm:$0xff] %vm448_vm2, %v447_v38 }
 0x118 PF: > { %s13_s12 = sadd.s32 1, %s563_s12  }
 0x119   : > { %p10_p4 = scmp.ge.s32.totalorder %s13_s12, 4  }
 0x11b   :  { %12 = sbr.rel (!%p10_p4) target bundleno = 1 (0x1), region = 73 }

</bundles_post_ra>
